<compile_context>
chip_gen: v7x
topology: tpu7x:2x2x1
jax: 0.10.0
libtpu: 0.0.40
codegen_flags: <defaults>
</compile_context>

<pallas_src>
import functools

import jax
import jax.numpy as jnp
import numpy as np
from jax.experimental import pallas as pl
from jax.experimental.pallas import tpu as pltpu


# ---------------------------------------------------------------------------
# Fused attention kernel: one (batch) slice per grid step.
#   x_ref    : (1, N, C)    input tokens for this batch element
#   wqkv_ref : (C, 3C)      fused [Wq*scale | Wk | Wv] (pre-transposed, x @ W)
#   wp_ref   : (C, C)       output projection weight (pre-transposed)
#   bp_ref   : (1, C)       output projection bias
#   o_ref    : (1, N, C)    output tokens
# ---------------------------------------------------------------------------
def _attention_kernel(x_ref, wqkv_ref, wp_ref, bp_ref, o_ref, *, num_heads, head_dim):
    C = num_heads * head_dim
    x = x_ref[0]                                                    # (N, C)
    N = x.shape[0]

    # Fused Q/K/V projection: one MXU pass, 3C-wide (lane-dense) result.
    # Scale is already folded into the Q columns of wqkv.
    qkv = jnp.dot(x, wqkv_ref[...], preferred_element_type=jnp.float32)   # (N, 3C)

    acc = jnp.zeros((N, C), jnp.float32)
    for h in range(num_heads):                                      # static unroll
        lo = h * head_dim
        qh = qkv[:, lo:lo + head_dim]                               # (N, hd), pre-scaled
        kh = qkv[:, C + lo:C + lo + head_dim]                       # (N, hd)
        vh = qkv[:, 2 * C + lo:2 * C + lo + head_dim]               # (N, hd)

        # s = q @ k^T expressed as a contraction (no explicit transpose).
        s = jax.lax.dot_general(
            qh, kh, (((1,), (1,)), ((), ())),
            preferred_element_type=jnp.float32)                     # (N, N)

        # Numerically stable softmax over keys.
        s = s - jnp.max(s, axis=-1, keepdims=True)
        p = jnp.exp(s)
        p = p / jnp.sum(p, axis=-1, keepdims=True)

        oh = jnp.dot(p, vh, preferred_element_type=jnp.float32)     # (N, hd)

        # Fused output projection: merge-heads + proj == sum_h oh @ Wp[rows_h].
        acc = acc + jnp.dot(oh, wp_ref[lo:lo + head_dim, :],
                            preferred_element_type=jnp.float32)     # (N, C)

    acc = acc + bp_ref[...].astype(jnp.float32)                     # bias broadcast
    o_ref[0] = acc.astype(o_ref.dtype)


# ---------------------------------------------------------------------------
# Parameter prep (done once, outside the kernel):
#   * concatenate Wq/Wk/Wv into one (C, 3C) matrix
#   * fold the attention scale into the Q columns
# Weights are stored pre-transposed as (C_in, C_out) so kernels compute x @ W.
# ---------------------------------------------------------------------------
def prepare_params(raw, num_heads):
    C = raw["wq_t"].shape[0]
    head_dim = C // num_heads
    scale = float(head_dim) ** -0.5
    wqkv_t = jnp.concatenate(
        [raw["wq_t"] * scale, raw["wk_t"], raw["wv_t"]], axis=1)    # (C, 3C)
    return {
        "wqkv_t": wqkv_t,
        "wp_t": raw["wp_t"],
        "bp": raw["bp"].reshape(1, C),
    }


# ---------------------------------------------------------------------------
# Forward pass
# ---------------------------------------------------------------------------
def attention_forward(x, params, num_heads):
    B, N, C = x.shape
    head_dim = C // num_heads
    kernel = functools.partial(
        _attention_kernel, num_heads=num_heads, head_dim=head_dim)

    return pl.pallas_call(
        kernel,
        grid=(B,),
        out_shape=jax.ShapeDtypeStruct((B, N, C), x.dtype),
        in_specs=[
            pl.BlockSpec((1, N, C), lambda b: (b, 0, 0)),      # x: one batch slice
            pl.BlockSpec((C, 3 * C), lambda b: (0, 0)),        # fused qkv weight (resident)
            pl.BlockSpec((C, C), lambda b: (0, 0)),            # proj weight (resident)
            pl.BlockSpec((1, C), lambda b: (0, 0)),            # proj bias (resident)
        ],
        out_specs=pl.BlockSpec((1, N, C), lambda b: (b, 0, 0)),
        compiler_params=pltpu.CompilerParams(
            dimension_semantics=("parallel",)),                # shard batch over TCs (v7x)
    )(x, params["wqkv_t"], params["wp_t"], params["bp"])


# ---------------------------------------------------------------------------
# Pure-JAX reference (mirrors the PyTorch forward, mask=None, dropout=0.0)
# ---------------------------------------------------------------------------
def attention_ref(x, raw, num_heads):
    B, N, C = x.shape
    hd = C // num_heads
    scale = float(hd) ** -0.5

    def split(t):
        return t.reshape(B, N, num_heads, hd).transpose(0, 2, 1, 3)

    q = split(x @ raw["wq_t"])
    k = split(x @ raw["wk_t"])
    v = split(x @ raw["wv_t"])
    attn = jnp.einsum("bhnd,bhmd->bhnm", q, k) * scale
    attn = jax.nn.softmax(attn, axis=-1)
    o = jnp.einsum("bhnm,bhmd->bhnd", attn, v)
    o = o.transpose(0, 2, 1, 3).reshape(B, N, C)
    return o @ raw["wp_t"] + raw["bp"]


# ---------------------------------------------------------------------------
if __name__ == "__main__":
    B, N, C = 2, 16, 32
    num_heads = 4  # head_dim = 8

    key = jax.random.PRNGKey(0)
    kx, kq, kk, kv, kp, kb = jax.random.split(key, 6)

    x = jax.random.normal(kx, (B, N, C), dtype=jnp.float32)
    raw = {
        # weights pre-transposed: (C_in, C_out); Q/K/V have no bias, proj does.
        "wq_t": 0.05 * jax.random.normal(kq, (C, C), dtype=jnp.float32),
        "wk_t": 0.05 * jax.random.normal(kk, (C, C), dtype=jnp.float32),
        "wv_t": 0.05 * jax.random.normal(kv, (C, C), dtype=jnp.float32),
        "wp_t": 0.05 * jax.random.normal(kp, (C, C), dtype=jnp.float32),
        "bp": 0.05 * jax.random.normal(kb, (C,), dtype=jnp.float32),
    }

    params = prepare_params(raw, num_heads)
    out = attention_forward(x, params, num_heads)
    out = jax.block_until_ready(out)

    ref = attention_ref(x, raw, num_heads)
    np.testing.assert_allclose(np.asarray(out), np.asarray(ref), rtol=2e-5, atol=2e-5)

    print("KERNEL_OK")
</pallas_src>

<mosaic_0001>
module attributes {stable_mosaic.version = 11 : i64} {
  func.func @_attention_kernel(%arg0: i32, %arg1: memref<1x16x32xf32, #tpu.memory_space<vmem>>, %arg2: memref<32x96xf32, #tpu.memory_space<vmem>>, %arg3: memref<32x32xf32, #tpu.memory_space<vmem>>, %arg4: memref<1x32xf32, #tpu.memory_space<vmem>>, %arg5: memref<1x16x32xf32, #tpu.memory_space<vmem>>) attributes {dimension_semantics = [#tpu.dimension_semantics<parallel>], iteration_bounds = array<i64: 2>, scalar_prefetch = 0 : i64, scratch_operands = 0 : i64, tpu.core_type = #tpu.core_type<tc>, window_params = [{transform_indices = @transform_0, window_bounds = array<i64: 1, 16, 32>}, {pipeline_mode = #tpu.pipeline_mode<synchronous>, transform_indices = @transform_1, window_bounds = array<i64: 32, 96>}, {pipeline_mode = #tpu.pipeline_mode<synchronous>, transform_indices = @transform_2, window_bounds = array<i64: 32, 32>}, {pipeline_mode = #tpu.pipeline_mode<synchronous>, transform_indices = @transform_3, window_bounds = array<i64: 1, 32>}, {transform_indices = @transform_4, window_bounds = array<i64: 1, 16, 32>}]} {
    %c0 = arith.constant 0 : index
    %c0_0 = arith.constant 0 : index
    %c0_1 = arith.constant 0 : index
    %0 = vector.load %arg1[%c0, %c0_0, %c0_1] : memref<1x16x32xf32, #tpu.memory_space<vmem>>, vector<1x16x32xf32>
    %1 = vector.shape_cast %0 : vector<1x16x32xf32> to vector<16x32xf32>
    %c0_2 = arith.constant 0 : index
    %c0_3 = arith.constant 0 : index
    %2 = vector.load %arg2[%c0_2, %c0_3] : memref<32x96xf32, #tpu.memory_space<vmem>>, vector<32x96xf32>
    %cst = arith.constant dense<0.000000e+00> : vector<16x96xf32>
    %3 = tpu.matmul %1, %2, %cst {dimension_numbers = #tpu.dot_dimension_numbers<[1], [0], [0], [1], [0, 0, 1, 1], [], []>} : vector<16x32xf32>, vector<32x96xf32>, vector<16x96xf32> -> vector<16x96xf32>
    %cst_4 = arith.constant 0.000000e+00 : f32
    %4 = vector.broadcast %cst_4 : f32 to vector<16x32xf32>
    %5 = vector.extract_strided_slice %3 {offsets = [0, 0], sizes = [16, 8], strides = [1, 1]} : vector<16x96xf32> to vector<16x8xf32>
    %6 = vector.extract_strided_slice %3 {offsets = [0, 32], sizes = [16, 8], strides = [1, 1]} : vector<16x96xf32> to vector<16x8xf32>
    %7 = vector.extract_strided_slice %3 {offsets = [0, 64], sizes = [16, 8], strides = [1, 1]} : vector<16x96xf32> to vector<16x8xf32>
    %cst_5 = arith.constant dense<0.000000e+00> : vector<16x16xf32>
    %8 = tpu.matmul %5, %6, %cst_5 {dimension_numbers = #tpu.dot_dimension_numbers<[1], [1], [0], [0], [0, 0, 1, 0], [], []>} : vector<16x8xf32>, vector<16x8xf32>, vector<16x16xf32> -> vector<16x16xf32>
    %cst_6 = arith.constant dense<0xFF800000> : vector<16xf32>
    %9 = vector.multi_reduction <maximumf>, %8, %cst_6 [1] : vector<16x16xf32> to vector<16xf32>
    %10 = vector.shape_cast %9 : vector<16xf32> to vector<16x1xf32>
    %11 = vector.broadcast %10 : vector<16x1xf32> to vector<16x16xf32>
    %12 = arith.subf %8, %11 : vector<16x16xf32>
    %13 = math.exp %12 : vector<16x16xf32>
    %cst_7 = arith.constant dense<0.000000e+00> : vector<16xf32>
    %14 = vector.multi_reduction <add>, %13, %cst_7 [1] : vector<16x16xf32> to vector<16xf32>
    %15 = vector.shape_cast %14 : vector<16xf32> to vector<16x1xf32>
    %16 = vector.broadcast %15 : vector<16x1xf32> to vector<16x16xf32>
    %17 = arith.divf %13, %16 : vector<16x16xf32>
    %cst_8 = arith.constant dense<0.000000e+00> : vector<16x8xf32>
    %18 = tpu.matmul %17, %7, %cst_8 {dimension_numbers = #tpu.dot_dimension_numbers<[1], [0], [0], [1], [0, 0, 1, 1], [], []>} : vector<16x16xf32>, vector<16x8xf32>, vector<16x8xf32> -> vector<16x8xf32>
    %c0_9 = arith.constant 0 : index
    %c0_10 = arith.constant 0 : index
    %19 = vector.load %arg3[%c0_9, %c0_10] : memref<32x32xf32, #tpu.memory_space<vmem>>, vector<8x32xf32>
    %cst_11 = arith.constant dense<0.000000e+00> : vector<16x32xf32>
    %20 = tpu.matmul %18, %19, %cst_11 {dimension_numbers = #tpu.dot_dimension_numbers<[1], [0], [0], [1], [0, 0, 1, 1], [], []>} : vector<16x8xf32>, vector<8x32xf32>, vector<16x32xf32> -> vector<16x32xf32>
    %21 = arith.addf %4, %20 : vector<16x32xf32>
    %22 = vector.extract_strided_slice %3 {offsets = [0, 8], sizes = [16, 8], strides = [1, 1]} : vector<16x96xf32> to vector<16x8xf32>
    %23 = vector.extract_strided_slice %3 {offsets = [0, 40], sizes = [16, 8], strides = [1, 1]} : vector<16x96xf32> to vector<16x8xf32>
    %24 = vector.extract_strided_slice %3 {offsets = [0, 72], sizes = [16, 8], strides = [1, 1]} : vector<16x96xf32> to vector<16x8xf32>
    %cst_12 = arith.constant dense<0.000000e+00> : vector<16x16xf32>
    %25 = tpu.matmul %22, %23, %cst_12 {dimension_numbers = #tpu.dot_dimension_numbers<[1], [1], [0], [0], [0, 0, 1, 0], [], []>} : vector<16x8xf32>, vector<16x8xf32>, vector<16x16xf32> -> vector<16x16xf32>
    %cst_13 = arith.constant dense<0xFF800000> : vector<16xf32>
    %26 = vector.multi_reduction <maximumf>, %25, %cst_13 [1] : vector<16x16xf32> to vector<16xf32>
    %27 = vector.shape_cast %26 : vector<16xf32> to vector<16x1xf32>
    %28 = vector.broadcast %27 : vector<16x1xf32> to vector<16x16xf32>
    %29 = arith.subf %25, %28 : vector<16x16xf32>
    %30 = math.exp %29 : vector<16x16xf32>
    %cst_14 = arith.constant dense<0.000000e+00> : vector<16xf32>
    %31 = vector.multi_reduction <add>, %30, %cst_14 [1] : vector<16x16xf32> to vector<16xf32>
    %32 = vector.shape_cast %31 : vector<16xf32> to vector<16x1xf32>
    %33 = vector.broadcast %32 : vector<16x1xf32> to vector<16x16xf32>
    %34 = arith.divf %30, %33 : vector<16x16xf32>
    %cst_15 = arith.constant dense<0.000000e+00> : vector<16x8xf32>
    %35 = tpu.matmul %34, %24, %cst_15 {dimension_numbers = #tpu.dot_dimension_numbers<[1], [0], [0], [1], [0, 0, 1, 1], [], []>} : vector<16x16xf32>, vector<16x8xf32>, vector<16x8xf32> -> vector<16x8xf32>
    %c8 = arith.constant 8 : index
    %c0_16 = arith.constant 0 : index
    %36 = vector.load %arg3[%c8, %c0_16] : memref<32x32xf32, #tpu.memory_space<vmem>>, vector<8x32xf32>
    %cst_17 = arith.constant dense<0.000000e+00> : vector<16x32xf32>
    %37 = tpu.matmul %35, %36, %cst_17 {dimension_numbers = #tpu.dot_dimension_numbers<[1], [0], [0], [1], [0, 0, 1, 1], [], []>} : vector<16x8xf32>, vector<8x32xf32>, vector<16x32xf32> -> vector<16x32xf32>
    %38 = arith.addf %21, %37 : vector<16x32xf32>
    %39 = vector.extract_strided_slice %3 {offsets = [0, 16], sizes = [16, 8], strides = [1, 1]} : vector<16x96xf32> to vector<16x8xf32>
    %40 = vector.extract_strided_slice %3 {offsets = [0, 48], sizes = [16, 8], strides = [1, 1]} : vector<16x96xf32> to vector<16x8xf32>
    %41 = vector.extract_strided_slice %3 {offsets = [0, 80], sizes = [16, 8], strides = [1, 1]} : vector<16x96xf32> to vector<16x8xf32>
    %cst_18 = arith.constant dense<0.000000e+00> : vector<16x16xf32>
    %42 = tpu.matmul %39, %40, %cst_18 {dimension_numbers = #tpu.dot_dimension_numbers<[1], [1], [0], [0], [0, 0, 1, 0], [], []>} : vector<16x8xf32>, vector<16x8xf32>, vector<16x16xf32> -> vector<16x16xf32>
    %cst_19 = arith.constant dense<0xFF800000> : vector<16xf32>
    %43 = vector.multi_reduction <maximumf>, %42, %cst_19 [1] : vector<16x16xf32> to vector<16xf32>
    %44 = vector.shape_cast %43 : vector<16xf32> to vector<16x1xf32>
    %45 = vector.broadcast %44 : vector<16x1xf32> to vector<16x16xf32>
    %46 = arith.subf %42, %45 : vector<16x16xf32>
    %47 = math.exp %46 : vector<16x16xf32>
    %cst_20 = arith.constant dense<0.000000e+00> : vector<16xf32>
    %48 = vector.multi_reduction <add>, %47, %cst_20 [1] : vector<16x16xf32> to vector<16xf32>
    %49 = vector.shape_cast %48 : vector<16xf32> to vector<16x1xf32>
    %50 = vector.broadcast %49 : vector<16x1xf32> to vector<16x16xf32>
    %51 = arith.divf %47, %50 : vector<16x16xf32>
    %cst_21 = arith.constant dense<0.000000e+00> : vector<16x8xf32>
    %52 = tpu.matmul %51, %41, %cst_21 {dimension_numbers = #tpu.dot_dimension_numbers<[1], [0], [0], [1], [0, 0, 1, 1], [], []>} : vector<16x16xf32>, vector<16x8xf32>, vector<16x8xf32> -> vector<16x8xf32>
    %c16 = arith.constant 16 : index
    %c0_22 = arith.constant 0 : index
    %53 = vector.load %arg3[%c16, %c0_22] : memref<32x32xf32, #tpu.memory_space<vmem>>, vector<8x32xf32>
    %cst_23 = arith.constant dense<0.000000e+00> : vector<16x32xf32>
    %54 = tpu.matmul %52, %53, %cst_23 {dimension_numbers = #tpu.dot_dimension_numbers<[1], [0], [0], [1], [0, 0, 1, 1], [], []>} : vector<16x8xf32>, vector<8x32xf32>, vector<16x32xf32> -> vector<16x32xf32>
    %55 = arith.addf %38, %54 : vector<16x32xf32>
    %56 = vector.extract_strided_slice %3 {offsets = [0, 24], sizes = [16, 8], strides = [1, 1]} : vector<16x96xf32> to vector<16x8xf32>
    %57 = vector.extract_strided_slice %3 {offsets = [0, 56], sizes = [16, 8], strides = [1, 1]} : vector<16x96xf32> to vector<16x8xf32>
    %58 = vector.extract_strided_slice %3 {offsets = [0, 88], sizes = [16, 8], strides = [1, 1]} : vector<16x96xf32> to vector<16x8xf32>
    %cst_24 = arith.constant dense<0.000000e+00> : vector<16x16xf32>
    %59 = tpu.matmul %56, %57, %cst_24 {dimension_numbers = #tpu.dot_dimension_numbers<[1], [1], [0], [0], [0, 0, 1, 0], [], []>} : vector<16x8xf32>, vector<16x8xf32>, vector<16x16xf32> -> vector<16x16xf32>
    %cst_25 = arith.constant dense<0xFF800000> : vector<16xf32>
    %60 = vector.multi_reduction <maximumf>, %59, %cst_25 [1] : vector<16x16xf32> to vector<16xf32>
    %61 = vector.shape_cast %60 : vector<16xf32> to vector<16x1xf32>
    %62 = vector.broadcast %61 : vector<16x1xf32> to vector<16x16xf32>
    %63 = arith.subf %59, %62 : vector<16x16xf32>
    %64 = math.exp %63 : vector<16x16xf32>
    %cst_26 = arith.constant dense<0.000000e+00> : vector<16xf32>
    %65 = vector.multi_reduction <add>, %64, %cst_26 [1] : vector<16x16xf32> to vector<16xf32>
    %66 = vector.shape_cast %65 : vector<16xf32> to vector<16x1xf32>
    %67 = vector.broadcast %66 : vector<16x1xf32> to vector<16x16xf32>
    %68 = arith.divf %64, %67 : vector<16x16xf32>
    %cst_27 = arith.constant dense<0.000000e+00> : vector<16x8xf32>
    %69 = tpu.matmul %68, %58, %cst_27 {dimension_numbers = #tpu.dot_dimension_numbers<[1], [0], [0], [1], [0, 0, 1, 1], [], []>} : vector<16x16xf32>, vector<16x8xf32>, vector<16x8xf32> -> vector<16x8xf32>
    %c24 = arith.constant 24 : index
    %c0_28 = arith.constant 0 : index
    %70 = vector.load %arg3[%c24, %c0_28] : memref<32x32xf32, #tpu.memory_space<vmem>>, vector<8x32xf32>
    %cst_29 = arith.constant dense<0.000000e+00> : vector<16x32xf32>
    %71 = tpu.matmul %69, %70, %cst_29 {dimension_numbers = #tpu.dot_dimension_numbers<[1], [0], [0], [1], [0, 0, 1, 1], [], []>} : vector<16x8xf32>, vector<8x32xf32>, vector<16x32xf32> -> vector<16x32xf32>
    %72 = arith.addf %55, %71 : vector<16x32xf32>
    %c0_30 = arith.constant 0 : index
    %c0_31 = arith.constant 0 : index
    %73 = vector.load %arg4[%c0_30, %c0_31] : memref<1x32xf32, #tpu.memory_space<vmem>>, vector<1x32xf32>
    %74 = vector.broadcast %73 : vector<1x32xf32> to vector<16x32xf32>
    %75 = arith.addf %72, %74 : vector<16x32xf32>
    %c0_32 = arith.constant 0 : index
    %c0_33 = arith.constant 0 : index
    %c0_34 = arith.constant 0 : index
    %76 = vector.load %arg5[%c0_32, %c0_33, %c0_34] : memref<1x16x32xf32, #tpu.memory_space<vmem>>, vector<1x16x32xf32>
    %77 = vector.shape_cast %76 : vector<1x16x32xf32> to vector<16x32xf32>
    %78 = vector.shape_cast %75 : vector<16x32xf32> to vector<1x16x32xf32>
    tpu.vector_store %arg5[%c0_32, %c0_33, %c0_34], %78 {strides = array<i32>} : memref<1x16x32xf32, #tpu.memory_space<vmem>>, vector<1x16x32xf32>,
    return
  }
  func.func @transform_0(%arg0: i32) -> (i32, i32, i32) {
    %c0_i32 = arith.constant 0 : i32
    %c0_i32_0 = arith.constant 0 : i32
    %c0_i32_1 = arith.constant 0 : i32
    return %arg0, %c0_i32, %c0_i32_0 : i32, i32, i32
  }
  func.func @transform_1(%arg0: i32) -> (i32, i32) {
    %c0_i32 = arith.constant 0 : i32
    %c0_i32_0 = arith.constant 0 : i32
    %c0_i32_1 = arith.constant 0 : i32
    return %c0_i32, %c0_i32_0 : i32, i32
  }
  func.func @transform_2(%arg0: i32) -> (i32, i32) {
    %c0_i32 = arith.constant 0 : i32
    %c0_i32_0 = arith.constant 0 : i32
    %c0_i32_1 = arith.constant 0 : i32
    return %c0_i32, %c0_i32_0 : i32, i32
  }
  func.func @transform_3(%arg0: i32) -> (i32, i32) {
    %c0_i32 = arith.constant 0 : i32
    %c0_i32_0 = arith.constant 0 : i32
    %c0_i32_1 = arith.constant 0 : i32
    return %c0_i32, %c0_i32_0 : i32, i32
  }
  func.func @transform_4(%arg0: i32) -> (i32, i32, i32) {
    %c0_i32 = arith.constant 0 : i32
    %c0_i32_0 = arith.constant 0 : i32
    %c0_i32_1 = arith.constant 0 : i32
    return %arg0, %c0_i32, %c0_i32_0 : i32, i32, i32
  }
}

</mosaic_0001>

<bundles_post_ra>
// kernel: tpu_custom_call.1
= control target key start
LH: loop header
LB: loop body
LE: loop exit
PB: predicated region body
PF: predicated region fallthrough
CT: control target
= control target key end

     0   :  { %9 = vsyncpa [#allocation3], 0  ;;  %s2534_s0 = inlined_call_operand.hbm [shape: f32[2,16,32], index: 0, kind: input, shape index: {}]   ;;  %s2535_s1 = inlined_call_operand.hbm [shape: f32[32,96], index: 1, kind: input, shape index: {}]   ;;  %s2536_s2 = inlined_call_operand.hbm [shape: f32[32,32], index: 2, kind: input, shape index: {}]   ;;  %s2537_s3 = inlined_call_operand.vmem [shape: f32[1,32], index: 3, kind: input, shape index: {}]   ;;  %s2538_s4 = inlined_call_operand.hbm [shape: f32[2,16,32], index: 4, kind: output, shape index: {}]  }
   0x1   :  { %11 = vsyncpa [#allocation3 + $0x1], 0 }
   0x2   :  { %12 = vsyncpa [#allocation6], 0 }
   0x3   :  { %13 = vsyncpa [#allocation4], 0 }
   0x4   :  { %15 = vsyncpa [#allocation4 + $0x1], 0  ;;  %s2184_s15 = smov 0   ;;  %s2186_s16 = smov 0  }
   0x5   :  { %s2188_s17 = smov 0   ;;  %s2190_s18 = smov 0  }
   0x6 LB: > { %s2205_s19 = sadd.s32 4294967295, %s2138_s18   ;;  %s1582_s20 = sadd.s32 4294967294, %s2138_s18   ;;  %s2138_s18 = sphi %s2190_s18, %s2560_s18   ;;  %s2134_s17 = sphi %s2188_s17, %s2559_s17   ;;  %s2130_s16 = sphi %s2186_s16, %s2558_s16   ;;  %s2126_s15 = sphi %s2184_s15, %s2557_s15  }
   0x7   : > { %p41_p0 = scmp.ne.s32.totalorder %s2130_s16, %s2126_s15  ;;  %p2539_p1 = scmp.eq.s32.totalorder %s2205_s19, 0 }
   0x8   : > { %p134_p3 = scmp.eq.s32.totalorder %s1582_s20, 1  ;;  %p1583_p5 = scmp.ge.s32.totalorder %s2138_s18, 1 }
   0x9   : > { %p2214_p4 = por %p2539_p1, %p41_p0  ;;  %p141_p7 = scmp.lt.s32.totalorder %s2138_s18, 3 }
   0xa   : > { %p2219_p6 = por %p134_p3, %p41_p0  ;;  %s2140_s24 = smov [#allocation5]  }
   0xb   : > { %s2542_s21 = scalar_select %p2214_p4, 1, 0 }
   0xc   : > { %s2543_s22 = scalar_select %p2219_p6, 1, 0 }
   0xd   : > { %p2224_p8 = pnand %p1583_p5, %p141_p7  ;;  %s153_s25 = sshll.u32 %s2140_s24, 4  ;;  %s2228_s25 = int_to_ptr.vmem [resolvable:$true] %s153_s25 }
   0xe   : > { %s2141_s27 = smov [#allocation7]   ;;  %s1982_s5 = scalar_lea.hbm %s2535_s1, 512 }
   0xf   : > { %p1840_p9 = pneg %p2224_p8  ;;  %s166_s28 = sshll.u32 %s2141_s27, 4  ;;  %s2239_s28 = int_to_ptr.vmem [resolvable:$true] %s166_s28 }
  0x10   : > { %p1983_p12 = scmp.ne.s32.totalorder %s2535_s1, %s1982_s5  ;;  %p1989_p5 = scmp.lt.u32.totalorder %s1982_s5, %s2535_s1 }
  0x11   : > { %p2235_p11 = pnand %p1840_p9, %p2539_p1 }
  0x13   : > { %p1984_p13 = pneg %p2235_p11 }
  0x15   : > { %p1985_p0 = pnand %p1984_p13, %p1983_p12 }
  0x17   : > { %p1986_p3 = pneg %p1985_p0 }
  0x19   : > { %p1991_p7 = pnand %p1989_p5, %p1986_p3 }
  0x1b   : > { %1994 = shalt.err (!%p1991_p7)
}
  0x1c   : > { %s1995_s10 = scalar_lea.vmem %s2228_s25, 512  ;;  %p2003_p2 = scmp.lt.s32.totalorder %s2228_s25, %s2228_s25 }
  0x1d   : > { %p1996_p9 = scmp.ne.s32.totalorder %s2228_s25, %s1995_s10  ;;  %p2004_p12 = scmp.lt.s32.totalorder %s1995_s10, %s1995_s10 }
  0x1f   : > { %p1998_p10 = pnand %p1996_p9, %p1984_p13  ;;  %p2005_p0 = por %p2004_p12, %p2003_p2 }
  0x21   : > { %p1999_p1 = pneg %p1998_p10 }
  0x23   : > { %p2006_p6 = pnand %p2005_p0, %p1999_p1 }
  0x25   : > { %2009 = shalt.err (!%p2006_p6)
}
  0x26   : > { %s2142_s11 = smov 128   ;;  %s2143_s12 = smov 8  }
  0x27   : > { %1843 = dma.hbm_to_vmem [thread:$0]  (!%p2235_p11), %s2535_s1, 512, %s2228_s25, [#allocation6], %s2142_s11, %s2142_s11, %s2143_s12  }
  0x28   : > { %s2010_s27 = scalar_lea.hbm %s2536_s2, 512 }
  0x29   : > { %p2011_p1 = scmp.ne.s32.totalorder %s2536_s2, %s2010_s27  ;;  %p2017_p10 = scmp.lt.u32.totalorder %s2010_s27, %s2536_s2 }
  0x2b   : > { %p2013_p2 = pnand %p2011_p1, %p1984_p13 }
  0x2d   : > { %p2014_p6 = pneg %p2013_p2 }
  0x2f   : > { %p2019_p3 = pnand %p2017_p10, %p2014_p6 }
  0x31   : > { %2022 = shalt.err (!%p2019_p3)
}
  0x32   : > { %s2023_s25 = scalar_lea.vmem %s2239_s28, 512  ;;  %p2031_p12 = scmp.lt.s32.totalorder %s2239_s28, %s2239_s28 }
  0x33   : > { %p2024_p5 = scmp.ne.s32.totalorder %s2239_s28, %s2023_s25  ;;  %p2032_p0 = scmp.lt.s32.totalorder %s2023_s25, %s2023_s25 }
  0x35   : > { %p2026_p7 = pnand %p2024_p5, %p1984_p13  ;;  %p2033_p1 = por %p2032_p0, %p2031_p12 }
  0x37   : > { %p2027_p9 = pneg %p2026_p7 }
  0x39   : > { %p2034_p2 = pnand %p2033_p1, %p2027_p9 }
  0x3b   : > { %2037 = shalt.err (!%p2034_p2)
}
  0x3c   : > { %1846 = dma.hbm_to_vmem [thread:$0]  (!%p2235_p11), %s2536_s2, 512, %s2239_s28, [#allocation6], %s2142_s11, %s2142_s11, %s2143_s12  }
  0x3d   : > { %s2300_s26 = sadd.s32 1, %s2138_s18   ;;  %s28_s9 = sadd.s32 1, %s2134_s17 }
  0x3e   : > { %s25_s10 = ssub.s32 %s2138_s18, %s2300_s26  ;;  %p35_p13 = scmp.ne.s32.totalorder %s2134_s17, %s2130_s16 }
  0x3f   : > { %p26_p6 = scmp.eq.s32.totalorder %s25_s10, 0  ;;  %p36_p10 = scmp.eq.s32.totalorder %s2138_s18, 0 }
  0x40   : > { %p2546_p3 = scmp.eq.s32.totalorder %s2205_s19, 1  ;;  %p1857_p7 = scmp.lt.s32.totalorder %s2138_s18, 2 }
  0x41   : > { %s2316_s14 = scalar_select %p26_p6, %s2134_s17, %s28_s9  }
  0x42   : > { %p2310_p5 = por %p2546_p3, %p35_p13  ;;  %p37_p9 = por %p36_p10, %p35_p13 }
  0x43   : > { %s183_s20 = sand.u32 1, %s2134_s17   ;;  %s1635_s28 = sshll.u32 %s2138_s18, 8 }
  0x44   : > { %s2547_s13 = scalar_select %p2310_p5, 1, 0 }
  0x45   : > { %s1587_s24 = sshll.u32 %s183_s20, 4  ;;  %s2323_s30 = scalar_lea.hbm %s2534_s0, %s1635_s28 }
  0x46   : > { %s187_s5 = scalar_lea.vmem [#allocation2], %s1587_s24  ;;  %p2327_p11 = pnand %p1857_p7, %p37_p9 }
  0x47   : > { %s194_s6 = sshll.u32 %s187_s5, 4  ;;  %s2331_s7 = scalar_lea.sflag [#allocation3], %s183_s20  ;;  %s2325_s6 = int_to_ptr.vmem [resolvable:$true] %s194_s6 }
  0x48   : > { %s2038_s8 = scalar_lea.hbm %s2323_s30, 256  ;;  %p2040_p0 = pneg %p2327_p11 }
  0x49   : > { %p2039_p12 = scmp.ne.s32.totalorder %s2323_s30, %s2038_s8  ;;  %s2043_s24 = scalar_lea.hbm %s2534_s0, 512 }
  0x4a   : > { %p2044_p13 = scmp.lt.u32.totalorder %s2323_s30, %s2534_s0  ;;  %p2045_p6 = scmp.lt.u32.totalorder %s2043_s24, %s2038_s8 }
  0x4b   : > { %p2041_p1 = pnand %p2040_p0, %p2039_p12  ;;  %p2047_p3 = scmp.lt.u32.totalorder %s2038_s8, %s2323_s30 }
  0x4c   : > { %p2046_p10 = por %p2045_p6, %p2044_p13 }
  0x4d   : > { %p2042_p2 = pneg %p2041_p1 }
  0x4e   : > { %p2048_p7 = por %p2047_p3, %p2046_p10 }
  0x50   : > { %p2049_p9 = pnand %p2048_p7, %p2042_p2 }
  0x52   : > { %2052 = shalt.err (!%p2049_p9)
}
  0x53   : > { %s2053_s20 = scalar_lea.vmem %s2325_s6, 256  ;;  %s2144_s29 = smov [#allocation2]  }
  0x54   : > { %p2054_p12 = scmp.ne.s32.totalorder %s2325_s6, %s2053_s20  ;;  %s2058_s5 = sshll.u32 %s2144_s29, 4  ;;  %s2059_s5 = int_to_ptr.vmem [resolvable:$false] %s2058_s5 }
  0x55   : > { %s2060_s9 = scalar_lea.vmem %s2059_s5, 512  ;;  %p2061_p4 = scmp.lt.s32.totalorder %s2325_s6, %s2059_s5 }
  0x56   : > { %p2056_p1 = pnand %p2054_p12, %p2040_p0  ;;  %p2062_p13 = scmp.lt.s32.totalorder %s2060_s9, %s2053_s20 }
  0x58   : > { %p2057_p5 = pneg %p2056_p1  ;;  %p2063_p6 = por %p2062_p13, %p2061_p4 }
  0x5a   : > { %p2064_p10 = pnand %p2063_p6, %p2057_p5 }
  0x5c   : > { %2067 = shalt.err (!%p2064_p10)
}
  0x5d   : > { %1850 = dma.hbm_to_vmem [thread:$0]  (!%p2327_p11), %s2323_s30, 256, %s2325_s6, %s2331_s7, %s2142_s11, %s2142_s11, %s2143_s12  }
  0x5e   : > { %206 = sbr.rel (%p2224_p8) target bundleno = 2501 (0x9c5), region = 36  ;;  %s2365_s8 = sand.u32 (!%p2224_p8), 1, %s2130_s16  }
  0x5f   : > { %s1591_s10 = sshll.u32 (!%p2224_p8), %s2365_s8, 4  ;;  %s209_s24 = scalar_lea.sflag (!%p2224_p8), [#allocation3], %s2365_s8 }
  0x60   : > { %s212_s25 = scalar_lea.vmem (!%p2224_p8), [#allocation2], %s1591_s10  ;;  %p2549_p4 = scmp.ne.s32.totalorder (!%p2224_p8), %s2542_s21, 0 }
  0x65   : > { %2113 = dma.done.wait (%p2549_p4), %s209_s24, 256  }
  0x66   : > { %2115 = vsyncadd (%p2549_p4), %s209_s24, 4294967040  ;;  %p2550_p5 = scmp.eq.s32.totalorder %s2205_s19, 0 }
  0x68   : > { %2117 = dma.done.wait (%p2550_p5), [#allocation6], 1024   ;;  %p2551_p8 = pmov %p2550_p5 }
  0x69   : > { %vm251_vm0 = vcmask 261120   ;;  %v247_v0 = vld [vmem:[#allocation5] sm:$0xff]  ;;  %v248_v1 = vld [vmem:[#allocation5 + $0x8] sm:$0xff]  ;;  %v249_v2 = vld [vmem:[#allocation5 + $0x10] sm:$0xff]  ;;  %vm339_vm1 = vcmask 64512   ;;  %s2145_s21 = smov 96  }
  0x6a   : > { %2119 = vsyncadd (%p2551_p8), [#allocation6], 4294966272  ;;  %v1774_v3 = vpack.c.bf16 %v248_v1, %v247_v0  ;;  %v250_v4 = vld [vmem:[#allocation5 + $0x18] sm:$0xff]  ;;  %v245_v5 = vld [vmem:[%s212_s25] sm:$0xff]  ;;  %vm423_vm3 = vcmask 130048   ;;  %s2146_s23 = smov 64  }
  0x6b   : > { %v1778_v6 = vpack.c.bf16 %v250_v4, %v249_v2  ;;  %1695 = vmatprep.mubr.msk.f32.mxu0 %vm251_vm0, %v245_v5  ;;  %v246_v7 = vld [vmem:[%s212_s25 + $0x8] sm:$0xff]  ;;  %vm2394_vm2 = vmpackc.low %vm339_vm1, %vm339_vm1  ;;  %s2147_s11 = smov 88   ;;  %s2148_s12 = smov 120  }
  0x6c   : > { %1775 = vmatprep.subr.bf16.mxu0 %v1774_v3  ;;  %s2149_s30 = smov 80   ;;  %s2150_s6 = smov 112  }
  0x6d   : > { %1777 = vmatpush3.bf16.msra.mxu0 %v1774_v3  ;;  %s2151_s7 = smov 56   ;;  %s2152_s28 = smov 72  }
  0x6e   : > { %1779 = vmatprep.subr.bf16.mxu0 %v1778_v6  ;;  %s2153_s27 = smov 104   ;;  %s2154_s20 = smov 48  }
  0x6f   : > { %s2155_s29 = smov 40   ;;  %s244_s5 = scalar_lea.vmem [#allocation8], %s1591_s10 }
  0x70   : > { %s1490_s9 = sshll.u32 %s244_s5, 4  ;;  %s1477_s10 = scalar_lea.sflag [#allocation4], %s2365_s8  ;;  %s2483_s9 = int_to_ptr.vmem [resolvable:$true] %s1490_s9 }
  0x71   : > { %1781 = vmatpush3.bf16.msra.mxu0 %v1778_v6  ;;  %p2554_p0 = scmp.ne.s32.totalorder %s2547_s13, 0 }
  0x74   : > { %1696 = vmatmul.mubr.msk.f32.vlgmr.msra.gmra.mrb[0].mxu0 %vm251_vm0, %v246_v7 }
 0x147   : > { %v2381_v8 = vpop.f32.mrb[0].mxu0 }
 0x148   : > { %v2383_v9 = vpop.f32.mrb[1].mxu0 }
 0x149   : > { %1702 = vmatprep.mubr.msk.f32.mxu1 %vm339_vm1, %v2383_v9  ;;  %v2389_v10 = vpack.i.bf16 %v2381_v8, %v2383_v9 }
 0x14b   : > { %1911 = vrot.lane.b32.xlu0 %v2389_v10, %s2145_s21  ;;  %s1636_s21 = sshll.u32 %s2205_s19, 8  ;;  %s2068_s19 = scalar_lea.vmem %s2483_s9, 256 }
 0x14c   : > { %p2069_p11 = scmp.ne.s32.totalorder %s2483_s9, %s2068_s19 }
 0x14e   : > { %p2070_p2 = pnand %p2069_p11, %p2554_p0 }
 0x150   : > { %p2071_p3 = pneg %p2070_p2 }
 0x1bd   : > { %v1912_v11 = vpop.permute.xlu0 %1911 }
 0x1be   : > { %v1914_v12 = vunpack.i.h.bf16 %v1912_v11  ;;  %v1913_v13 = vunpack.i.l.bf16 %v1912_v11 }
 0x1c0   : > { %v1782_v15 = vpack.c.bf16 %v1914_v12, %v1913_v13 }
 0x1c2   : > { %1784 = vmatprep.subr.msk.bf16.mxu1 %vm2394_vm2, %v1782_v15 }
 0x1c3   : > { %1787 = vmatpush3.bf16.xpose.msk.msra.mxu1 %vm2394_vm2, %v1782_v15 }
 0x1ca   : > { %1703 = vmatmul.mubr.msk.f32.vlgmr.msra.gmra.mrb[0].mxu1 %vm339_vm1, %v2381_v8 }
 0x29d   : > { %v1704_v16 = vpop.f32.mrb[0].mxu1 }
 0x29e   : > { %v414_v17 = vpop.f32.mrb[1].mxu1  ;;  %v427_v18 = vsel %vm423_vm3, %v1704_v16, -inf }
 0x29f   : > { %428 = vmax.xlane.f32.xlu1 %v427_v18  ;;  %v424_v19 = vsel %vm423_vm3, %v414_v17, -inf }
 0x2a0   : > { %425 = vmax.xlane.f32.xlu0 %v424_v19 }
 0x2b0   : > { %1916 = vrot.lane.b32.xlu1 %v2389_v10, %s2146_s23 }
 0x2b4   : > { %1921 = vrot.lane.b32.xlu1 %v2389_v10, %s2147_s11 }
 0x2b6   : > { %536 = vrot.lane.b32.xlu0 %v2381_v8, %s2148_s12 }
 0x32c   : > { %v429_v20 = vpop.xlane.xlu1 %428 }
 0x32d   : > { %v431_v21 = vsub.f32 %v1704_v16, %v429_v20  ;;  %v426_v22 = vpop.xlane.xlu0 %425 }
 0x32e   : > { %v430_v23 = vsub.f32 %v414_v17, %v426_v22 }
 0x32f   : > { %v434_v24 = vmul.f32 1.442695, %v431_v21 }
 0x330   : > { %v432_v25 = vmul.f32 1.442695, %v430_v23  ;;  %v1917_v26 = vpop.permute.xlu1 %1916 }
 0x331   : > { %1950 = vpow2.f32 %v434_v24  ;;  %v1919_v27 = vunpack.i.h.bf16 %v1917_v26  ;;  %v1918_v28 = vunpack.i.l.bf16 %v1917_v26  ;;  %v537_v49 = vpop.permute.xlu0 %536 }
 0x332   : > { %1952 = vpow2.f32 %v432_v25 }
 0x333   : > { %v1788_v29 = vpack.c.bf16 %v1919_v27, %v1918_v28 }
 0x334   : > { %v1922_v30 = vpop.permute.xlu1 %1921 }
 0x335   : > { %v1924_v31 = vunpack.i.h.bf16 %v1922_v30  ;;  %v1923_v32 = vunpack.i.l.bf16 %v1922_v30  ;;  %1789 = vmatprep.subr.bf16.mxu1 %v1788_v29 }
 0x336   : > { %1791 = vmatpush3.bf16.msra.mxu1 %v1788_v29 }
 0x337   : > { %v1792_v33 = vpack.c.bf16 %v1924_v31, %v1923_v32 }
 0x339   : > { %1794 = vmatprep.subr.msk.bf16.mxu1 %vm2394_vm2, %v1792_v33 }
 0x33b   : > { %v1951_v34 = vpop.eup %1950 }
 0x33c   : > { %v439_v35 = vsel %vm423_vm3, %v1951_v34, 0.0  ;;  %v1953_v36 = vpop.eup %1952 }
 0x33d   : > { %440 = vadd.xlane.f32.xlu1 %v439_v35  ;;  %v436_v37 = vsel %vm423_vm3, %v1953_v36, 0.0  ;;  %v533_v35 = vld [vmem:[#allocation7] sm:$0xff] }
 0x341   : > { %437 = vadd.xlane.f32.xlu1 %v436_v37 }
 0x352   : > { %534 = vrot.lane.b32.xlu1 %v2383_v9, %s2148_s12  ;;  %s2488_s12 = scalar_lea.hbm %s2538_s4, %s1636_s21 }
 0x356   : > { %1926 = vrot.lane.b32.xlu1 %v2389_v10, %s2149_s30  ;;  %s2156_s30 = smov [#allocation8]  }
 0x35a   : > { %897 = vrot.lane.b32.xlu1 %v2383_v9, %s2150_s6 }
 0x35e   : > { %899 = vrot.lane.b32.xlu1 %v2381_v8, %s2150_s6  ;;  %s2072_s6 = sshll.u32 %s2156_s30, 4  ;;  %s2073_s6 = int_to_ptr.vmem [resolvable:$false] %s2072_s6 }
 0x35f   : > { %p2075_p7 = scmp.lt.s32.totalorder %s2483_s9, %s2073_s6 }
 0x3ca   : > { %v441_v38 = vpop.xlane.xlu1 %440 }
 0x3cb   : > { %1954 = vrcp.f32 %v441_v38 }
 0x3ce   : > { %v438_v39 = vpop.xlane.xlu1 %437 }
 0x3cf   : > { %1956 = vrcp.f32 %v438_v39 }
 0x3d2   : > { %v535_v40 = vpop.permute.xlu1 %534 }
 0x3d5   : > { %v1955_v42 = vpop.eup %1954 }
 0x3d6   : > { %v1927_v41 = vpop.permute.xlu1 %1926  ;;  %v445_v47 = vmul.f32 %v1955_v42, %v1951_v34  ;;  %v734_v34 = vld [vmem:[#allocation7 + $0x8] sm:$0xff] }
 0x3d7   : > { %v1929_v44 = vunpack.i.h.bf16 %v1927_v41  ;;  %v1928_v45 = vunpack.i.l.bf16 %v1927_v41 }
 0x3d9   : > { %v1957_v43 = vpop.eup %1956  ;;  %v1802_v48 = vpack.c.bf16 %v1929_v44, %v1928_v45 }
 0x3da   : > { %v443_v46 = vmul.f32 %v1957_v43, %v1953_v36  ;;  %v898_v50 = vpop.permute.xlu1 %897 }
 0x3dc   : > { %1709 = vmatprep.mubr.msk.f32.mxu1 %vm423_vm3, %v443_v46 }
 0x3dd   : > { %1710 = vmatmul.mubr.msk.f32.vlgmr.msra.gmra.mrb[2].mxu1 %vm423_vm3, %v445_v47 }
 0x3de   : > { %1797 = vmatpush3.bf16.xpose.msk.msra.mxu1 %vm2394_vm2, %v1792_v33  ;;  %1716 = vmatprep.mubr.msk.f32.mxu1 %vm339_vm1, %v535_v40  ;;  %v900_v51 = vpop.permute.xlu1 %899 }
 0x3df   : > { %1804 = vmatprep.subr.msk.bf16.mxu1 %vm2394_vm2, %v1802_v48 }
 0x3e5   : > { %1717 = vmatmul.mubr.msk.f32.vlgmr.msra.gmra.mrb[4].mxu1 %vm339_vm1, %v537_v49 }
 0x3e6   : > { %1807 = vmatpush3.bf16.xpose.msk.msra.mxu1 %vm2394_vm2, %v1802_v48  ;;  %1740 = vmatprep.mubr.msk.f32.mxu1 %vm339_vm1, %v898_v50 }
 0x3ed   : > { %1741 = vmatmul.mubr.msk.f32.vlgmr.msra.gmra.mrb[6].mxu1 %vm339_vm1, %v900_v51 }
 0x4b0   : > { %v2429_v52 = vpop.f32.mrb[2].mxu1 }
 0x4b1   : > { %v2431_v53 = vpop.f32.mrb[3].mxu1 }
 0x4b8   : > { %v1718_v54 = vpop.f32.mrb[4].mxu1 }
 0x4b9   : > { %v616_v55 = vpop.f32.mrb[5].mxu1  ;;  %v628_v56 = vsel %vm423_vm3, %v1718_v54, -inf }
 0x4ba   : > { %629 = vmax.xlane.f32.xlu0 %v628_v56  ;;  %v625_v57 = vsel %vm423_vm3, %v616_v55, -inf }
 0x4bb   : > { %626 = vmax.xlane.f32.xlu1 %v625_v57 }
 0x4c0   : > { %v2435_v58 = vpop.f32.mrb[6].mxu1 }
 0x4c1   : > { %v979_v59 = vpop.f32.mrb[7].mxu1  ;;  %v991_v7 = vsel %vm423_vm3, %v2435_v58, -inf }
 0x4c2   : > { %v988_v6 = vsel %vm423_vm3, %v979_v59, -inf }
 0x547   : > { %v630_v60 = vpop.xlane.xlu0 %629 }
 0x548   : > { %v632_v61 = vsub.f32 %v1718_v54, %v630_v60  ;;  %v627_v62 = vpop.xlane.xlu1 %626  ;;  %v1097_v54 = vld [vmem:[#allocation7 + $0x10] sm:$0xff] }
 0x549   : > { %v631_v63 = vsub.f32 %v616_v55, %v627_v62 }
 0x54a   : > { %v635_v0 = vmul.f32 1.442695, %v632_v61 }
 0x54b   : > { %v633_v1 = vmul.f32 1.442695, %v631_v63 }
 0x54c   : > { %1958 = vpow2.f32 %v635_v0 }
 0x54d   : > { %1960 = vpow2.f32 %v633_v1 }
 0x556   : > { %v1959_v2 = vpop.eup %1958 }
 0x557   : > { %v1961_v3 = vpop.eup %1960  ;;  %v640_v4 = vsel %vm423_vm3, %v1959_v2, 0.0 }
 0x558   : > { %641 = vadd.xlane.f32.xlu0 %v640_v4  ;;  %v637_v5 = vsel %vm423_vm3, %v1961_v3, 0.0 }
 0x559   : > { %638 = vadd.xlane.f32.xlu1 %v637_v5  ;;  %v1381_v5 = vld [vmem:[#allocation7 + $0x18] sm:$0xff] }
 0x56a   : > { %1931 = vrot.lane.b32.xlu1 %v2389_v10, %s2151_s7  ;;  %s2074_s7 = scalar_lea.vmem %s2073_s6, 512 }
 0x56b   : > { %p2076_p9 = scmp.lt.s32.totalorder %s2074_s7, %s2068_s19 }
 0x56d   : > { %p2077_p12 = por %p2076_p9, %p2075_p7 }
 0x56e   : > { %1936 = vrot.lane.b32.xlu0 %v2389_v10, %s2152_s28  ;;  %1181 = vrot.lane.b32.xlu1 %v2383_v9, %s2153_s27 }
 0x56f   : > { %p2078_p1 = pnand %p2077_p12, %p2071_p3 }
 0x572   : > { %1183 = vrot.lane.b32.xlu1 %v2381_v8, %s2153_s27 }
 0x58d   : > { %989 = vmax.xlane.f32.xlu0 %v988_v6 }
 0x596   : > { %992 = vmax.xlane.f32.xlu1 %v991_v7 }
 0x5a7   : > { %1941 = vrot.lane.b32.xlu1 %v2389_v10, %s2154_s20 }
 0x5ab   : > { %1946 = vrot.lane.b32.xlu1 %v2389_v10, %s2155_s29 }
 0x5e5   : > { %v642_v11 = vpop.xlane.xlu0 %641 }
 0x5e6   : > { %1962 = vrcp.f32 %v642_v11  ;;  %v639_v12 = vpop.xlane.xlu1 %638 }
 0x5e7   : > { %1964 = vrcp.f32 %v639_v12 }
 0x5e9   : > { %v1937_v9 = vpop.permute.xlu0 %1936 }
 0x5ea   : > { %v1939_v13 = vunpack.i.h.bf16 %v1937_v9  ;;  %v1938_v8 = vunpack.i.l.bf16 %v1937_v9  ;;  %v1932_v15 = vpop.permute.xlu1 %1931 }
 0x5eb   : > { %v1934_v16 = vunpack.i.h.bf16 %v1932_v15  ;;  %v1933_v17 = vunpack.i.l.bf16 %v1932_v15 }
 0x5ec   : > { %v1812_v18 = vpack.c.bf16 %v1939_v13, %v1938_v8 }
 0x5ed   : > { %v1798_v19 = vpack.c.bf16 %v1934_v16, %v1933_v17  ;;  %v1629_v16 = vld [vmem:[%s2537_s3] ss:$0 sm:$0xff] }
 0x5ee   : > { %1814 = vmatprep.subr.msk.bf16.mxu1 %vm2394_vm2, %v1812_v18  ;;  %v1182_v20 = vpop.permute.xlu1 %1181 }
 0x5ef   : > { %1799 = vmatprep.subr.bf16.mxu0 %v1798_v19  ;;  %1817 = vmatpush3.bf16.xpose.msk.msra.mxu1 %vm2394_vm2, %v1812_v18 }
 0x5f0   : > { %v1963_v10 = vpop.eup %1962  ;;  %1759 = vmatprep.mubr.msk.f32.mxu1 %vm339_vm1, %v1182_v20  ;;  %1801 = vmatpush3.bf16.msra.mxu0 %v1798_v19 }
 0x5f1   : > { %v1965_v21 = vpop.eup %1964  ;;  %v646_v23 = vmul.f32 %v1963_v10, %v1959_v2  ;;  %1726 = vmatprep.subr.mxu0 %v734_v34 }
 0x5f2   : > { %v644_v22 = vmul.f32 %v1965_v21, %v1961_v3  ;;  %v1184_v24 = vpop.permute.xlu1 %1183 }
 0x5f4   : > { %1723 = vmatprep.mubr.msk.f32.mxu0 %vm423_vm3, %v644_v22 }
 0x5f5   : > { %1724 = vmatmul.mubr.msk.f32.vlgmr.msra.gmra.mrb[2].mxu0 %vm423_vm3, %v646_v23 }
 0x5f6   : > { %1760 = vmatmul.mubr.msk.f32.vlgmr.msra.gmra.mrb[8].mxu1 %vm339_vm1, %v1184_v24  ;;  %1727 = vmatpush3.msra.mxu0 %v734_v34 }
 0x5f7   : > { %1731 = vmatprep.subr.mxu0 %v533_v35 }
 0x61a   : > { %v990_v25 = vpop.xlane.xlu0 %989 }
 0x61b   : > { %v994_v26 = vsub.f32 %v979_v59, %v990_v25 }
 0x61d   : > { %v996_v27 = vmul.f32 1.442695, %v994_v26 }
 0x61f   : > { %1966 = vpow2.f32 %v996_v27 }
 0x623   : > { %v993_v14 = vpop.xlane.xlu1 %992 }
 0x624   : > { %v995_v28 = vsub.f32 %v2435_v58, %v993_v14 }
 0x626   : > { %v998_v29 = vmul.f32 1.442695, %v995_v28 }
 0x627   : > { %v1942_v37 = vpop.permute.xlu1 %1941 }
 0x628   : > { %1968 = vpow2.f32 %v998_v29  ;;  %v1944_v39 = vunpack.i.h.bf16 %v1942_v37  ;;  %v1943_v40 = vunpack.i.l.bf16 %v1942_v37 }
 0x629   : > { %v1967_v30 = vpop.eup %1966 }
 0x62a   : > { %v1000_v31 = vsel %vm423_vm3, %v1967_v30, 0.0  ;;  %v1808_v45 = vpack.c.bf16 %v1944_v39, %v1943_v40 }
 0x62b   : > { %1001 = vadd.xlane.f32.xlu0 %v1000_v31  ;;  %v1947_v49 = vpop.permute.xlu1 %1946 }
 0x62c   : > { %v1949_v55 = vunpack.i.h.bf16 %v1947_v49  ;;  %v1948_v56 = vunpack.i.l.bf16 %v1947_v49 }
 0x632   : > { %v1969_v32 = vpop.eup %1968 }
 0x633   : > { %v1003_v33 = vsel %vm423_vm3, %v1969_v32, 0.0 }
 0x634   : > { %1004 = vadd.xlane.f32.xlu0 %v1003_v33 }
 0x6b8   : > { %v1002_v36 = vpop.xlane.xlu0 %1001 }
 0x6b9   : > { %1970 = vrcp.f32 %v1002_v36 }
 0x6c1   : > { %v1005_v38 = vpop.xlane.xlu0 %1004 }
 0x6c2   : > { %1972 = vrcp.f32 %v1005_v38 }
 0x6c3   : > { %v1971_v47 = vpop.eup %1970 }
 0x6c4   : > { %v1007_v51 = vmul.f32 %v1971_v47, %v1967_v30 }
 0x6c8   : > { %v1725_v41 = vpop.f32.mrb[2].mxu0 }
 0x6c9   : > { %v725_v42 = vpop.f32.mrb[3].mxu0  ;;  %v1761_v43 = vpop.f32.mrb[8].mxu1 }
 0x6ca   : > { %1728 = vmatprep.mubr.msk.f32.mxu0 %vm339_vm1, %v725_v42  ;;  %v1263_v44 = vpop.f32.mrb[9].mxu1  ;;  %v1275_v48 = vsel %vm423_vm3, %v1761_v43, -inf }
 0x6cb   : > { %1729 = vmatmul.mubr.msk.f32.vlgmr.msra.gmra.mrb[4].mxu0 %vm339_vm1, %v1725_v41  ;;  %v1272_v46 = vsel %vm423_vm3, %v1263_v44, -inf }
 0x6cc   : > { %1732 = vmatpush3.msra.mxu0 %v533_v35  ;;  %1273 = vmax.xlane.f32.xlu0 %v1272_v46  ;;  %v1973_v50 = vpop.eup %1972 }
 0x6cd   : > { %1733 = vmatprep.mubr.msk.f32.mxu0 %vm339_vm1, %v2431_v53  ;;  %1809 = vmatprep.subr.bf16.mxu0 %v1808_v45  ;;  %v1009_v57 = vmul.f32 %v1973_v50, %v1969_v32  ;;  %v1818_v53 = vpack.c.bf16 %v1949_v55, %v1948_v56 }
 0x6d0   : > { %1276 = vmax.xlane.f32.xlu0 %v1275_v48 }
 0x6d3   : > { %1734 = vmatmul.mubr.msk.f32.vlgmr.msra.gmra.mrb[4].mxu0 %vm339_vm1, %v2429_v52 }
 0x6d4   : > { %1811 = vmatpush3.bf16.msra.mxu0 %v1808_v45  ;;  %1747 = vmatprep.mubr.msk.f32.mxu0 %vm423_vm3, %v1007_v51 }
 0x6d5   : > { %1750 = vmatprep.subr.mxu0 %v1097_v54 }
 0x6d7   : > { %1748 = vmatmul.mubr.msk.f32.vlgmr.msra.gmra.mrb[6].mxu0 %vm423_vm3, %v1009_v57 }
 0x6d8   : > { %1751 = vmatpush3.msra.mxu0 %v1097_v54 }
 0x6d9   : > { %1819 = vmatprep.subr.bf16.mxu0 %v1818_v53 }
 0x759   : > { %v1274_v58 = vpop.xlane.xlu0 %1273 }
 0x75a   : > { %v1278_v59 = vsub.f32 %v1263_v44, %v1274_v58 }
 0x75c   : > { %v1280_v60 = vmul.f32 1.442695, %v1278_v59 }
 0x75d   : > { %v1277_v61 = vpop.xlane.xlu0 %1276 }
 0x75e   : > { %1974 = vpow2.f32 %v1280_v60  ;;  %v1279_v62 = vsub.f32 %v1761_v43, %v1277_v61 }
 0x760   : > { %v1282_v63 = vmul.f32 1.442695, %v1279_v62 }
 0x762   : > { %1976 = vpow2.f32 %v1282_v63 }
 0x768   : > { %v1975_v0 = vpop.eup %1974 }
 0x769   : > { %v1284_v52 = vsel %vm423_vm3, %v1975_v0, 0.0 }
 0x76a   : > { %1285 = vadd.xlane.f32.xlu0 %v1284_v52 }
 0x76c   : > { %v1977_v1 = vpop.eup %1976 }
 0x76d   : > { %v1287_v2 = vsel %vm423_vm3, %v1977_v1, 0.0 }
 0x76e   : > { %1288 = vadd.xlane.f32.xlu0 %v1287_v2 }
 0x7aa   : > { %v1749_v3 = vpop.f32.mrb[6].mxu0 }
 0x7ab   : > { %v1088_v4 = vpop.f32.mrb[7].mxu0 }
 0x7ac   : > { %1752 = vmatprep.mubr.msk.f32.mxu0 %vm339_vm1, %v1088_v4 }
 0x7ad   : > { %1753 = vmatmul.mubr.msk.f32.vlgmr.msra.gmra.mrb[4].mxu0 %vm339_vm1, %v1749_v3 }
 0x7ae   : > { %1821 = vmatpush3.bf16.msra.mxu0 %v1818_v53 }
 0x7af   : > { %1769 = vmatprep.subr.mxu0 %v1381_v5 }
 0x7f7   : > { %v1286_v6 = vpop.xlane.xlu0 %1285 }
 0x7f8   : > { %1978 = vrcp.f32 %v1286_v6 }
 0x7fb   : > { %v1289_v7 = vpop.xlane.xlu0 %1288 }
 0x7fc   : > { %1980 = vrcp.f32 %v1289_v7 }
 0x802   : > { %v1979_v11 = vpop.eup %1978 }
 0x803   : > { %v1291_v12 = vmul.f32 %v1979_v11, %v1975_v0 }
 0x805   : > { %1766 = vmatprep.mubr.msk.f32.mxu0 %vm423_vm3, %v1291_v12 }
 0x806   : > { %v1981_v9 = vpop.eup %1980 }
 0x807   : > { %v1293_v13 = vmul.f32 %v1981_v9, %v1977_v1 }
 0x809   : > { %1767 = vmatmul.mubr.msk.f32.vlgmr.msra.gmra.mrb[8].mxu0 %vm423_vm3, %v1293_v13 }
 0x80a   : > { %1770 = vmatpush3.msra.mxu0 %v1381_v5 }
 0x8dc   : > { %v1768_v8 = vpop.f32.mrb[8].mxu0 }
 0x8dd   : > { %v1372_v15 = vpop.f32.mrb[9].mxu0 }
 0x8de   : > { %1771 = vmatprep.mubr.msk.f32.mxu0 %vm339_vm1, %v1372_v15 }
 0x8df   : > { %1772 = vmatmul.mubr.msk.f32.vlgmr.msra.gmra.mrb[4].mxu0 %vm339_vm1, %v1768_v8 }
 0x9b2   : > { %v1773_v17 = vpop.f32.mrb[4].mxu0 }
 0x9b3   : > { %v1473_v18 = vadd.f32 %v1773_v17, %v1629_v16  ;;  %v1454_v19 = vpop.f32.mrb[5].mxu0 }
 0x9b4   : > { %v1472_v20 = vadd.f32 %v1629_v16, %v1454_v19 }
 0x9b5   : > { %1475 = vst.msk [vmem:[%s244_s5 + $0x8] sm:$0xff] %vm251_vm0, %v1473_v18 }
 0x9b6   : > { %1474 = vst.msk [vmem:[%s244_s5] sm:$0xff] %vm251_vm0, %v1472_v20 }
 0x9b7   : > { %2081 = shalt.err (!%p2078_p1)
}
 0x9b8   : > { %s2082_s28 = scalar_lea.hbm %s2488_s12, 256  ;;  %s2086_s29 = scalar_lea.hbm %s2538_s4, 512 }
 0x9b9   : > { %p2083_p13 = scmp.ne.s32.totalorder %s2488_s12, %s2082_s28  ;;  %p2087_p4 = scmp.lt.u32.totalorder %s2488_s12, %s2538_s4 }
 0x9ba   : > { %p2088_p5 = scmp.lt.u32.totalorder %s2086_s29, %s2082_s28  ;;  %p2090_p11 = scmp.lt.u32.totalorder %s2082_s28, %s2488_s12 }
 0x9bb   : > { %p2084_p6 = pnand %p2083_p13, %p2554_p0 }
 0x9bc   : > { %p2089_p8 = por %p2088_p5, %p2087_p4 }
 0x9bd   : > { %p2085_p10 = pneg %p2084_p6 }
 0x9be   : > { %p2091_p2 = por %p2090_p11, %p2089_p8 }
 0x9c0   : > { %p2092_p3 = pnand %p2091_p2, %p2085_p10 }
 0x9c2   : > { %2095 = shalt.err (!%p2092_p3)
}
 0x9c3   : > { %s2157_s25 = smov 128   ;;  %s2158_s21 = smov 8  }
 0x9c4   : > { %1838 = dma.vmem_to_hbm [thread:$0]  (%p2554_p0), %s2483_s9, 256, %s2488_s12, %s1477_s10, %s2157_s25, %s2157_s25, %s2158_s21  }
 0x9c5 PF: > { %s1505_s23 = sand.u32 1, %s2126_s15   ;;  %p2555_p7 = scmp.ne.s32.totalorder %s2543_s22, 0 }
 0x9c6   : > { %p2556_p9 = scmp.ge.s32.totalorder %s2138_s18, 2  ;;  %s1506_s11 = scalar_lea.sflag [#allocation4], %s1505_s23 }
 0x9c8   : > { %p1852_p12 = pnand %p2556_p9, %p2555_p7 }
 0x9ca   : > { %2121 = dma.done.wait (!%p1852_p12), %s1506_s11, 256  }
 0x9cb   : > { %2123 = vsyncadd (!%p1852_p12), %s1506_s11, 4294967040  ;;  %p18_p1 = scmp.ge.s32.totalorder %s2300_s26, 4   ;;  %s2557_s15 = smov %s2130_s16 }
 0x9cc   : > { %s2558_s16 = smov %s2134_s17  ;;  %s2559_s17 = smov %s2316_s14 }
 0x9cd   : > { %s2560_s18 = smov %s2300_s26  ;;  %20 = sbr.rel (!%p18_p1) target bundleno = 6 (0x6), region = 89 }
 0x9d4   :  { %1511 = vsyncpa [#allocation3], 1 }
 0x9d5   :  { %1513 = vsyncpa [#allocation3 + $0x1], 1 }
 0x9d6   :  { %1514 = vsyncpa [#allocation6], 1 }
 0x9d7   :  { %1515 = vsyncpa [#allocation4], 1 }
 0x9d8   :  { %1517 = vsyncpa [#allocation4 + $0x1], 1 }

</bundles_post_ra>
